<compile_context>
chip_gen: v6e
topology: v6e:2x2x1
jax: 0.10.0
libtpu: 0.0.40
codegen_flags: <defaults>
</compile_context>

<pallas_src>
import math

import jax
import jax.numpy as jnp
from jax import lax
from jax.experimental import pallas as pl
from jax.experimental.pallas import tpu as pltpu


def _round_up(n, m):
    return ((n + m - 1) // m) * m


def _cdiv(a, b):
    return -(-a // b)


def _posemb_kernel(x_ref, w_ref, ph_ref, out_ref):
    # x_ref:   (TB, 1)   f32 timesteps for this row tile
    # w_ref:   (1, Wp)   f32: [0, 2*pi*w, 2*pi*w, 0-pad]   (resident)
    # ph_ref:  (1, Wp)   f32: [0, 0...,   pi/2...,  0-pad]  (resident)
    # out_ref: (TB, Wp)  packed [x | sin(f) | cos(f) | 0-pad]
    x = x_ref[...]                                       # (TB, 1)
    freqs = x * w_ref[...] + ph_ref[...]                 # (TB, Wp) broadcast
    vals = jnp.sin(freqs)                                # cos lanes via +pi/2 phase
    lane = lax.broadcasted_iota(jnp.int32, freqs.shape, 1)
    out = jnp.where(lane == 0, x, vals)                  # lane 0 carries raw x
    out_ref[...] = out.astype(out_ref.dtype)


def _reference(x, weights):
    x2 = x.reshape(-1, 1).astype(jnp.float32)
    freqs = x2 * weights.reshape(1, -1).astype(jnp.float32) * 2.0 * math.pi
    return jnp.concatenate([x2, jnp.sin(freqs), jnp.cos(freqs)], axis=-1)


def learned_sinusoidal_pos_emb(x, weights, *, out_dtype=jnp.float32,
                               max_row_tile=4096, use_pallas=None):
    """x: (B,) timesteps; weights: (half_dim,). Returns (B, 1 + 2*half_dim)."""
    B = x.shape[0]
    H = weights.shape[0]
    W = 1 + 2 * H                      # logical output width
    Wp = _round_up(W, 128)             # lane-dense padded width

    if use_pallas is None:
        # Tiny problems: XLA expression beats kernel-launch + padding overhead.
        use_pallas = B * Wp >= 64 * 128
    if not use_pallas:
        return _reference(x, weights).astype(out_dtype)

    # Resident frequency / phase rows (2*pi folded into weights once).
    w2pi = weights.astype(jnp.float32) * (2.0 * math.pi)
    w_row = jnp.concatenate([jnp.zeros((1,), jnp.float32), w2pi, w2pi])
    w_pad = jnp.pad(w_row, (0, Wp - W)).reshape(1, Wp)
    ph_row = jnp.concatenate([jnp.zeros((1 + H,), jnp.float32),
                              jnp.full((H,), 0.5 * math.pi, jnp.float32)])
    ph_pad = jnp.pad(ph_row, (0, Wp - W)).reshape(1, Wp)

    # Row-tile selection: big tiles to amortize per-step overhead, bounded by a
    # VMEM budget (double-buffered output + f32 temps), row padding kept small,
    # and an even number (>=2) of grid steps for v7x megacore when B is large.
    out_bytes = jnp.dtype(out_dtype).itemsize
    per_row_bytes = Wp * (2 * out_bytes + 8)          # 2x out buf + freqs/vals f32
    vmem_budget = 20 << 20
    tb_cap = max(8, min(max_row_tile, (vmem_budget // per_row_bytes) // 8 * 8))
    n_steps = _cdiv(B, tb_cap)
    if B > 16:
        if n_steps < 2:
            n_steps = 2
        elif n_steps % 2:
            n_steps += 1
    TB = _round_up(_cdiv(B, n_steps), 8)
    Bp = n_steps * TB

    x2 = x.astype(jnp.float32).reshape(B, 1)
    if Bp != B:
        x2 = jnp.pad(x2, ((0, Bp - B), (0, 0)))

    out_p = pl.pallas_call(
        _posemb_kernel,
        out_shape=jax.ShapeDtypeStruct((Bp, Wp), out_dtype),
        grid_spec=pltpu.PrefetchScalarGridSpec(
            num_scalar_prefetch=0,
            grid=(n_steps,),
            in_specs=[
                pl.BlockSpec((TB, 1), lambda i: (i, 0)),   # timestep rows
                pl.BlockSpec((1, Wp), lambda i: (0, 0)),   # freq row, resident
                pl.BlockSpec((1, Wp), lambda i: (0, 0)),   # phase row, resident
            ],
            out_specs=pl.BlockSpec((TB, Wp), lambda i: (i, 0)),
        ),
        compiler_params=pltpu.CompilerParams(
            dimension_semantics=("parallel",),             # v7x: rows split over 2 TCs
            vmem_limit_bytes=32 << 20,                     # v5e default is only 16 MiB
        ),
    )(x2, w_pad, ph_pad)

    if Bp == B and Wp == W:
        return out_p                                       # zero-copy fast path
    return out_p[:B, :W]                                   # single slice, no concat


if __name__ == "__main__":
    key = jax.random.PRNGKey(0)
    kx, kw, kx2, kw2 = jax.random.split(key, 4)

    # Small shapes matching the module: dim=16 -> half_dim=8, batch of 8 timesteps.
    B, dim = 8, 16
    half_dim = dim // 2
    weights = jax.random.normal(kw, (half_dim,), dtype=jnp.float32)
    x = jax.random.uniform(kx, (B,), dtype=jnp.float32)        # timesteps in [0, 1)

    out = jax.block_until_ready(
        learned_sinusoidal_pos_emb(x, weights, use_pallas=True))
    ref = _reference(x, weights)
    assert out.shape == (B, 1 + dim), out.shape
    assert jnp.allclose(out, ref, atol=1e-4, rtol=1e-4), "mismatch vs reference"

    # Ragged case: B not a multiple of the tile, half_dim not lane-aligned
    # (exercises adaptive row tiling, lane padding, and the wrapper slice).
    B2, half2 = 300, 24
    w2 = jax.random.normal(kw2, (half2,), dtype=jnp.float32)
    x_2 = jax.random.uniform(kx2, (B2,), dtype=jnp.float32)
    out2 = jax.block_until_ready(learned_sinusoidal_pos_emb(x_2, w2))
    assert out2.shape == (B2, 1 + 2 * half2), out2.shape
    assert jnp.allclose(out2, _reference(x_2, w2), atol=1e-4, rtol=1e-4)

    # bf16 output path (halves writeback); looser tolerance.
    out3 = jax.block_until_ready(
        learned_sinusoidal_pos_emb(x_2, w2, out_dtype=jnp.bfloat16))
    assert out3.dtype == jnp.bfloat16
    assert jnp.allclose(out3.astype(jnp.float32), _reference(x_2, w2),
                        atol=3e-2, rtol=3e-2)

    print("KERNEL_OK")
</pallas_src>

<mosaic_0001>
module attributes {stable_mosaic.version = 11 : i64} {
  func.func @_posemb_kernel(%arg0: i32, %arg1: memref<8x1xf32, #tpu.memory_space<vmem>>, %arg2: memref<1x128xf32, #tpu.memory_space<vmem>>, %arg3: memref<1x128xf32, #tpu.memory_space<vmem>>, %arg4: memref<8x128xf32, #tpu.memory_space<vmem>>) attributes {dimension_semantics = [#tpu.dimension_semantics<parallel>], iteration_bounds = array<i64: 1>, scalar_prefetch = 0 : i64, scratch_operands = 0 : i64, tpu.core_type = #tpu.core_type<tc>, window_params = [{transform_indices = @transform_0, window_bounds = array<i64: 8, 1>}, {pipeline_mode = #tpu.pipeline_mode<synchronous>, transform_indices = @transform_1, window_bounds = array<i64: 1, 128>}, {pipeline_mode = #tpu.pipeline_mode<synchronous>, transform_indices = @transform_2, window_bounds = array<i64: 1, 128>}, {transform_indices = @transform_3, window_bounds = array<i64: 8, 128>}]} {
    %c0 = arith.constant 0 : index
    %c0_0 = arith.constant 0 : index
    %0 = vector.load %arg1[%c0, %c0_0] : memref<8x1xf32, #tpu.memory_space<vmem>>, vector<8x1xf32>
    %c0_1 = arith.constant 0 : index
    %c0_2 = arith.constant 0 : index
    %1 = vector.load %arg2[%c0_1, %c0_2] : memref<1x128xf32, #tpu.memory_space<vmem>>, vector<1x128xf32>
    %2 = vector.broadcast %0 : vector<8x1xf32> to vector<8x128xf32>
    %3 = vector.broadcast %1 : vector<1x128xf32> to vector<8x128xf32>
    %4 = arith.mulf %2, %3 : vector<8x128xf32>
    %c0_3 = arith.constant 0 : index
    %c0_4 = arith.constant 0 : index
    %5 = vector.load %arg3[%c0_3, %c0_4] : memref<1x128xf32, #tpu.memory_space<vmem>>, vector<1x128xf32>
    %6 = vector.broadcast %5 : vector<1x128xf32> to vector<8x128xf32>
    %7 = arith.addf %4, %6 : vector<8x128xf32>
    %8 = math.sin %7 : vector<8x128xf32>
    %9 = tpu.iota {dimensions = array<i32: 1>} : vector<8x128xi32>
    %c0_i32 = arith.constant 0 : i32
    %10 = vector.broadcast %c0_i32 : i32 to vector<8x128xi32>
    %11 = arith.cmpi eq, %9, %10 : vector<8x128xi32>
    %12 = vector.shape_cast %0 : vector<8x1xf32> to vector<8x1xf32>
    %13 = vector.broadcast %12 : vector<8x1xf32> to vector<8x128xf32>
    %14 = arith.select %11, %13, %8 : vector<8x128xi1>, vector<8x128xf32>
    %c0_5 = arith.constant 0 : index
    %c0_6 = arith.constant 0 : index
    %15 = vector.load %arg4[%c0_5, %c0_6] : memref<8x128xf32, #tpu.memory_space<vmem>>, vector<8x128xf32>
    tpu.vector_store %arg4[%c0_5, %c0_6], %14 {strides = array<i32>} : memref<8x128xf32, #tpu.memory_space<vmem>>, vector<8x128xf32>,
    return
  }
  func.func @transform_0(%arg0: i32) -> (i32, i32) {
    %c0_i32 = arith.constant 0 : i32
    %c0_i32_0 = arith.constant 0 : i32
    return %arg0, %c0_i32 : i32, i32
  }
  func.func @transform_1(%arg0: i32) -> (i32, i32) {
    %c0_i32 = arith.constant 0 : i32
    %c0_i32_0 = arith.constant 0 : i32
    %c0_i32_1 = arith.constant 0 : i32
    return %c0_i32, %c0_i32_0 : i32, i32
  }
  func.func @transform_2(%arg0: i32) -> (i32, i32) {
    %c0_i32 = arith.constant 0 : i32
    %c0_i32_0 = arith.constant 0 : i32
    %c0_i32_1 = arith.constant 0 : i32
    return %c0_i32, %c0_i32_0 : i32, i32
  }
  func.func @transform_3(%arg0: i32) -> (i32, i32) {
    %c0_i32 = arith.constant 0 : i32
    %c0_i32_0 = arith.constant 0 : i32
    return %arg0, %c0_i32 : i32, i32
  }
}

</mosaic_0001>

<bundles_post_ra>
// kernel: tpu_custom_call.1
= control target key start
LH: loop header
LB: loop body
LE: loop exit
PB: predicated region body
PF: predicated region fallthrough
CT: control target
= control target key end

     0   :  { %v205_v1 = vmov 0   ;;  %s270_s0 = inlined_call_operand.vmem [shape: f32[8,1], index: 0, kind: input, shape index: {}]   ;;  %s271_s1 = inlined_call_operand.vmem [shape: f32[1,128], index: 1, kind: input, shape index: {}]   ;;  %s272_s2 = inlined_call_operand.vmem [shape: f32[1,128], index: 2, kind: input, shape index: {}]   ;;  %s273_s3 = inlined_call_operand.hbm [shape: f32[8,128], index: 3, kind: output, shape index: {}]  }
   0x1   :  { %v15_v0 = vld [vmem:[%s270_s0] sm:$0xff]  ;;  %178 = vset.pattern.permute.xlu0 %v205_v1 }
   0x2   :  { %19 = vperm.xlu0 %178, %v15_v0  }
   0x3   :  { %8 = vsyncpa [#allocation3], 0  ;;  %v160_v2 = vld [vmem:[%s271_s1] ss:$0 sm:$0xff]  ;;  %v206_v17 = vmov 683565275  }
   0x4   :  { %v161_v3 = vld [vmem:[%s272_s2] ss:$0 sm:$0xff]  ;;  %v207_v19 = vmov 2475754826   ;;  %v208_v22 = vmov 2131351028  }
   0x5   :  { %v209_v25 = vmov 2102212464   ;;  %v210_v28 = vmov 920167782   ;;  %v211_v31 = vmov 1326507024  }
   0x6   :  { %s212_s0 = smov [#allocation2]  }
   0x7   :  { %s152_s1 = sshll.u32 %s212_s0, 4  ;;  %s153_s1 = int_to_ptr.vmem [resolvable:$true] %s152_s1 }
   0x8   :  { %s183_s2 = scalar_lea.vmem %s153_s1, 128  ;;  %p188_p1 = scmp.lt.s32.totalorder %s153_s1, %s153_s1 }
   0x9   :  { %p184_p0 = scmp.ne.s32.totalorder %s153_s1, %s183_s2  ;;  %p189_p2 = scmp.lt.s32.totalorder %s183_s2, %s183_s2 }
   0xb   :  { %p190_p3 = por %p189_p2, %p188_p1 }
   0xd   :  { %p191_p4 = pnand %p190_p3, %p184_p0 }
  0x7d   :  { %v242_v4 = vpop.permute.xlu0 %19 }
  0x7e   :  { %v28_v5 = vmul.f32 %v160_v2, %v242_v4 }
  0x80   :  { %v245_v6 = vadd.f32 %v161_v3, %v28_v5 }
  0x82   :  { %v40_v7 = vand.u32 2139095040, %v245_v6  ;;  %v37_v11 = vand.u32 2147483647, %v245_v6  ;;  %vm39_vm7 = vcmp.lt.s32.totalorder %v245_v6, 0  ;;  %vm129_vm13 = vweird.f32 %v245_v6 }
  0x84   :  { %v41_v8 = vshrl.u32 %v40_v7, 23  ;;  %v44_v14 = vand.u32 8388607, %v37_v11  ;;  %vm38_vm8 = vcmp.le.f32.partialorder %v37_v11, 0.7853982 }
  0x86   :  { %v162_v9 = vadd.s32 4294967169, %v41_v8  ;;  %v45_v33 = vor.u32 8388608, %v44_v14 }
  0x88   :  { %v47_v10 = vadd.s32 1, %v162_v9  ;;  %v85_v47 = vshll.u32 %v45_v33, 8 }
  0x8a   :  { %vm48_vm0 = vcmp.gt.s32.totalorder %v47_v10, 0 }
  0x8b   :  { %v49_v12 = vsel %vm48_vm0, %v47_v10, 0 }
  0x8c   :  { %v51_v13 = vand.u32 31, %v49_v12  ;;  %v50_v16 = vshrl.u32 %v49_v12, 5 }
  0x8e   :  { %v52_v15 = vsub.s32 32, %v51_v13  ;;  %v54_v18 = vshll.u32 %v206_v17, %v51_v13  ;;  %v57_v20 = vshll.u32 %v207_v19, %v51_v13  ;;  %v60_v24 = vshll.u32 %v208_v22, %v51_v13 }
  0x8f   :  { %v63_v27 = vshll.u32 %v209_v25, %v51_v13  ;;  %v66_v30 = vshll.u32 %v210_v28, %v51_v13  ;;  %vm69_vm1 = vcmp.lt.s32.totalorder %v50_v16, 1  ;;  %vm72_vm2 = vcmp.lt.s32.totalorder %v50_v16, 4 }
  0x90   :  { %v55_v21 = vshrl.u32 %v207_v19, %v52_v15  ;;  %v58_v23 = vshrl.u32 %v208_v22, %v52_v15  ;;  %v61_v26 = vshrl.u32 %v209_v25, %v52_v15  ;;  %v64_v29 = vshrl.u32 %v210_v28, %v52_v15 }
  0x91   :  { %v67_v32 = vshrl.u32 %v211_v31, %v52_v15  ;;  %v53_v42 = vshrl.u32 %v206_v17, %v52_v15  ;;  %vm71_vm3 = vcmp.lt.s32.totalorder %v50_v16, 3  ;;  %vm70_vm4 = vcmp.lt.s32.totalorder %v50_v16, 2 }
  0x92   :  { %v56_v34 = vor.u32 %v55_v21, %v54_v18  ;;  %v59_v35 = vor.u32 %v58_v23, %v57_v20  ;;  %v62_v36 = vor.u32 %v61_v26, %v60_v24  ;;  %v65_v37 = vor.u32 %v64_v29, %v63_v27 }
  0x93   :  { %v68_v38 = vor.u32 %v67_v32, %v66_v30  ;;  %v141_v28 = vlaneseq }
  0x94   :  { %v74_v39 = vsel %vm72_vm2, %v62_v36, 2102212464  ;;  %v77_v40 = vsel %vm69_vm1, %v56_v34, %v59_v35  ;;  %v81_v41 = vsel %vm69_vm1, %v59_v35, %v62_v36  ;;  %v78_v43 = vsel %vm72_vm2, %v65_v37, 920167782 }
  0x95   :  { %v82_v44 = vsel %vm72_vm2, %v68_v38, 1326507024  ;;  %v79_v45 = vsel %vm71_vm3, %v62_v36, %v78_v43  ;;  %v73_v48 = vsel %vm69_vm1, %v53_v42, %v56_v34  ;;  %v75_v49 = vsel %vm71_vm3, %v59_v35, %v74_v39 }
  0x96   :  { %v83_v46 = vsel %vm71_vm3, %v65_v37, %v82_v44  ;;  %v80_v50 = vsel %vm70_vm4, %v77_v40, %v79_v45  ;;  %v76_v56 = vsel %vm70_vm4, %v73_v48, %v75_v49  ;;  %v142_v31 = vand.u32 127, %v141_v28 }
  0x97   :  { %v84_v51 = vsel %vm70_vm4, %v81_v41, %v83_v46  ;;  %v254_v54 = vmul.u32.u64.low %v85_v47, %v80_v50  ;;  %v255_v55 = vmul.u32.u64.high %v85_v47, %v80_v50, %v254_v54  ;;  %v92_v58 = vmul.u32 %v85_v47, %v76_v56 }
  0x98   :  { %v251_v52 = vmul.u32.u64.low %v85_v47, %v84_v51  ;;  %v252_v53 = vmul.u32.u64.high %v85_v47, %v84_v51, %v251_v52  ;;  %vm143_vm11 = vcmp.eq.s32.totalorder %v142_v31, 0 }
  0x99   :  { %v95_v57 = vadd.s32 1, %v255_v55 }
  0x9a   :  { %vm94_vm5 = vc.u32 %v252_v53, %v254_v54  ;;  %v93_v8 = vadd.s32 %v254_v54, %v252_v53 }
  0x9b   :  { %v96_v59 = vsel %vm94_vm5, %v95_v57, %v255_v55 }
  0x9c   :  { %v97_v60 = vadd.s32 %v96_v59, %v92_v58 }
  0x9e   :  { %v98_v61 = vadd.s32 536870912, %v97_v60 }
  0xa0   :  { %v99_v62 = vshrl.u32 %v98_v61, 30 }
  0xa2   :  { %v100_v63 = vshll.u32 %v99_v62, 30  ;;  %v123_v22 = vsub.s32 4, %v99_v62 }
  0xa4   :  { %v101_v0 = vsub.s32 %v97_v60, %v100_v63  ;;  %v124_v25 = vsel %vm39_vm7, %v123_v22, %v99_v62 }
  0xa5   :  { %v126_v26 = vsel %vm38_vm8, 0, %v124_v25 }
  0xa6   :  { %v103_v1 = vsub.s32 0, %v101_v0  ;;  %v130_v27 = vadd.s32 3, %v126_v26 }
  0xa8   :  { %v163_v2 = vmin.u32 %v103_v1, %v101_v0  ;;  %v131_v29 = vand.u32 3, %v130_v27 }
  0xaa   :  { %v105_v3 = vclz %v163_v2  ;;  %vm136_vm9 = vcmp.eq.s32.totalorder %v131_v29, 2  ;;  %vm133_vm10 = vcmp.eq.s32.totalorder %v131_v29, 0  ;;  %vm132_vm12 = vcmp.lt.s32.totalorder %v131_v29, 2 }
  0xac   :  { %v164_v5 = vadd.s32 4294967294, %v105_v3 }
  0xae   :  { %vm165_vm6 = vcmp.lt.s32.totalorder %v164_v5, 0 }
  0xaf   :  { %v108_v7 = vsel %vm165_vm6, 0, %v164_v5 }
  0xb0   :  { %v109_v9 = vsub.s32 32, %v108_v7  ;;  %v113_v10 = vsub.s32 4294967266, %v108_v7  ;;  %v110_v12 = vshll.u32 %v101_v0, %v108_v7 }
  0xb2   :  { %v111_v13 = vshrl.u32 %v93_v8, %v109_v9  ;;  %v114_v14 = vadd.s32 127, %v113_v10 }
  0xb4   :  { %v112_v15 = vor.u32 %v111_v13, %v110_v12  ;;  %v115_v16 = vshll.u32 %v114_v14, 23 }
  0xb6   :  { %v116_v17 = vor.u32 4788187, %v115_v16  ;;  %v119_v19 = vcvt.s32.f32 %v112_v15 }
  0xb8   :  { %v117_v18 = vand.u32 2147483647, %v116_v17 }
  0xba   :  { %v120_v20 = vmul.f32 %v119_v19, %v117_v18 }
  0xbc   :  { %v121_v21 = vxor.u32 2147483648, %v120_v20 }
  0xbe   :  { %v122_v23 = vsel %vm39_vm7, %v121_v21, %v120_v20 }
  0xbf   :  { %v125_v24 = vsel %vm38_vm8, %v245_v6, %v122_v23 }
  0xc0   :  { %179 = vcosq.f32 %v125_v24 }
  0xc1   :  { %181 = vsinq.f32 %v125_v24 }
  0xcd   :  { %v180_v30 = vpop.eup %179 }
  0xce   :  { %v182_v32 = vpop.eup %181  ;;  %v137_v33 = vxor.u32 2147483648, %v180_v30 }
  0xcf   :  { %v134_v34 = vxor.u32 2147483648, %v182_v32 }
  0xd0   :  { %v138_v35 = vsel %vm136_vm9, %v137_v33, %v182_v32 }
  0xd1   :  { %v135_v11 = vsel %vm133_vm10, %v180_v30, %v134_v34 }
  0xd2   :  { %v139_v36 = vsel %vm132_vm12, %v135_v11, %v138_v35 }
  0xd3   :  { %v140_v37 = vsel %vm129_vm13, nan, %v139_v36 }
  0xd4   :  { %v144_v38 = vsel %vm143_vm11, %v242_v4, %v140_v37 }
  0xd5   :  { %145 = vst [vmem:[#allocation2] sm:$0xff] %v144_v38 }
  0xd6   :  { %194 = shalt.err (!%p191_p4)
}
  0xd7   :  { %155 = dma.vmem_to_hbm [thread:$0]  %s153_s1, 128, %s273_s3, [#allocation3]  }
  0xd8   :  { %203 = dma.done.wait [#allocation3], 128  }
  0xd9   :  { %204 = vsyncadd [#allocation3], 4294967168 }
  0xda   :  { %159 = vsyncpa [#allocation3], 1 }

</bundles_post_ra>
